<compile_context>
chip_gen: v7x
topology: tpu7x:2x2x1
jax: 0.10.0
libtpu: 0.0.40
codegen_flags: <defaults>
</compile_context>

<pallas_src>
import jax
import jax.numpy as jnp
from jax.experimental import pallas as pl
from jax.experimental.pallas import tpu as pltpu

_ITEM = 4  # float32 bytes


def _ceil_to(x, m):
    return -(-x // m) * m


# ---------------------------------------------------------------------------
# kernels
# ---------------------------------------------------------------------------
def _rec_attention_packed_kernel(x_ref, wsc_ref, e_ref, s_ref,
                                 repres_ref, alpha_ref):
    """Lane-dense path.

    x_ref:      (Bt, L*D) packed input rows (lane-dense)
    wsc_ref:    (L*D, L)  kron(I_L, w)          -> scores  = x @ wsc
    e_ref:      (L, L*D)  kron(I_L, ones(1,D))  -> alpha_p = alpha @ E
    s_ref:      (L*D, D)  kron(ones(L,1), I_D)  -> repres  = (alpha_p * x) @ S
    repres_ref: (Bt, D)
    alpha_ref:  (Bt, L)
    """
    x = x_ref[...].astype(jnp.float32)                       # (Bt, L*D)

    # scores[b, l] = <iput[b, l, :], w>  (block-diagonal mat-vec on the MXU)
    scores = jnp.dot(x, wsc_ref[...].astype(jnp.float32),
                     preferred_element_type=jnp.float32)     # (Bt, L)

    # numerically stable softmax over the sequence axis L, per batch row
    m = jnp.max(scores, axis=-1, keepdims=True)              # (Bt, 1)
    e = jnp.exp(scores - m)                                  # (Bt, L)
    s = jnp.sum(e, axis=-1, keepdims=True)                   # (Bt, 1)
    inv = pl.reciprocal(s, approx=True)                      # EUP slot
    inv = inv * (2.0 - s * inv)                              # 1 Newton step
    alpha = e * inv                                          # (Bt, L)

    # repres[b, d] = sum_l alpha[b, l] * iput[b, l, d]:
    # expand alpha over each D-segment (MXU), multiply (VPU, dense lanes),
    # reduce over L with a second MXU matmul.
    alpha_p = jnp.dot(alpha, e_ref[...].astype(jnp.float32),
                      preferred_element_type=jnp.float32)    # (Bt, L*D)
    repres = jnp.dot(alpha_p * x, s_ref[...].astype(jnp.float32),
                     preferred_element_type=jnp.float32)     # (Bt, D)

    repres_ref[...] = repres.astype(repres_ref.dtype)
    alpha_ref[...] = alpha.astype(alpha_ref.dtype)


def _rec_attention_3d_kernel(x_ref, w_ref, repres_ref, alpha_ref):
    """Fallback (lane-sparse) path for very long sequences where the packed
    helper matrices (O(L^2 * D)) would be too large."""
    x = x_ref[...].astype(jnp.float32)                       # (Bt, L, D)
    w = w_ref[...].astype(jnp.float32)                       # (1, D)
    scores = jnp.sum(x * w, axis=-1)                         # (Bt, L)
    m = jnp.max(scores, axis=-1, keepdims=True)
    e = jnp.exp(scores - m)
    s = jnp.sum(e, axis=-1, keepdims=True)
    inv = pl.reciprocal(s, approx=True)
    inv = inv * (2.0 - s * inv)
    alpha = e * inv
    repres = jnp.sum(alpha[:, :, None] * x, axis=1)          # (Bt, D)
    repres_ref[...] = repres.astype(repres_ref.dtype)
    alpha_ref[...] = alpha.astype(alpha_ref.dtype)


# ---------------------------------------------------------------------------
# tile sizing (lane-padding aware) + per-generation budgets
# ---------------------------------------------------------------------------
def _packed_tile_vmem(bt, L, D):
    """Real VMEM for one grid step of the packed kernel: lane padding,
    double buffering of I/O blocks, and ~3 tile-sized in-kernel temporaries
    (x as f32, alpha_p, weighted product)."""
    LD = L * D
    x_tile = _ceil_to(bt, 8) * _ceil_to(LD, 128) * _ITEM
    out_r = _ceil_to(bt, 8) * _ceil_to(D, 128) * _ITEM
    out_a = _ceil_to(bt, 8) * _ceil_to(L, 128) * _ITEM
    return 2 * (x_tile + out_r + out_a) + 3 * x_tile


def _packed_resident_vmem(L, D):
    """VMEM held by the constant helper matrices (constant index_map, still
    counted double-buffered to be safe)."""
    LD = L * D
    w_sc = _ceil_to(LD, 8) * _ceil_to(L, 128) * _ITEM
    e_m = _ceil_to(L, 8) * _ceil_to(LD, 128) * _ITEM
    s_m = _ceil_to(LD, 8) * _ceil_to(D, 128) * _ITEM
    return 2 * (w_sc + e_m + s_m)


def _3d_tile_vmem(bt, L, D):
    x_tile = bt * _ceil_to(L, 8) * _ceil_to(D, 128) * _ITEM  # D lane-padded!
    out_r = _ceil_to(bt, 8) * _ceil_to(D, 128) * _ITEM
    out_a = _ceil_to(bt, 8) * _ceil_to(L, 128) * _ITEM
    return 2 * (x_tile + out_r + out_a) + 3 * x_tile


def _device_budgets():
    """(nominal tile target bytes, vmem_limit_bytes, min grid steps)."""
    kind = ""
    try:
        kind = jax.devices()[0].device_kind.lower()
    except Exception:
        pass
    if "v5 lite" in kind or "v5e" in kind or "v5lite" in kind:
        # 128 MiB physical VMEM but 16 MiB default scope and ~0.8 TB/s HBM:
        # ~1 MiB nominal tiles already amortize the per-step overhead.
        return 1 << 20, 48 << 20, 1
    if "v6" in kind:
        # 128 MiB physical VMEM, ~1.4 TB/s HBM: go bigger, raise scoped VMEM.
        return 4 << 20, 64 << 20, 1
    # v7x (only 64 MiB physical VMEM, 2 TensorCores/chip) and unknown chips:
    # conservative VMEM cap, and keep >= 2 grid steps so both cores get work.
    return 2 << 20, 40 << 20, 2


def _choose_bt(B, L, D, *, tile_vmem, resident, tile_target, vmem_limit,
               min_grid):
    """Rows per grid step.  Legal values: B itself, or any multiple of 8."""
    if B <= 8:
        return B
    budget = int(vmem_limit * 0.70) - resident
    # rows hitting the nominal (HBM-side) tile-size target
    bt = max(8, (tile_target // max(1, L * D * _ITEM) // 8) * 8)
    # keep at least `min_grid` grid steps (v7x: one per TensorCore)
    if min_grid > 1:
        bt = min(bt, _ceil_to(pl.cdiv(B, min_grid), 8))
    # shrink until the lane-padded, double-buffered footprint (+temps) fits
    while bt > 8 and tile_vmem(bt, L, D) > budget:
        bt -= 8
    return min(bt, B)


# ---------------------------------------------------------------------------
# wrappers
# ---------------------------------------------------------------------------
def _rec_attention_packed(iput, context_vector, tile_target, vmem_limit,
                          min_grid, block_rows):
    B, L, D = iput.shape
    LD = L * D
    dtype = iput.dtype

    # (B, L, D) -> (B, L*D): contiguous trailing-dim merge (free), lane-dense.
    x_p = iput.reshape(B, LD)

    w = context_vector.astype(dtype)                          # (D, 1)
    eye_l = jnp.eye(L, dtype=dtype)
    w_score = jnp.kron(eye_l, w)                              # (L*D, L)
    e_mat = jnp.kron(eye_l, jnp.ones((1, D), dtype))          # (L,   L*D)
    s_mat = jnp.kron(jnp.ones((L, 1), dtype),
                     jnp.eye(D, dtype=dtype))                 # (L*D, D)

    if block_rows is not None:
        bt = min(block_rows, B)
    else:
        bt = _choose_bt(B, L, D, tile_vmem=_packed_tile_vmem,
                        resident=_packed_resident_vmem(L, D),
                        tile_target=tile_target, vmem_limit=vmem_limit,
                        min_grid=min_grid)
    grid = (pl.cdiv(B, bt),)   # no jnp.pad: last block is partial & masked

    cost = pl.CostEstimate(
        flops=2 * B * LD * (2 * L + D) + 6 * B * L,
        transcendentals=B * L + B,
        bytes_accessed=(B * LD + 2 * LD * L + LD * D + B * D + B * L) * _ITEM,
    )

    repres2d, alpha = pl.pallas_call(
        _rec_attention_packed_kernel,
        out_shape=(
            jax.ShapeDtypeStruct((B, D), dtype),
            jax.ShapeDtypeStruct((B, L), dtype),
        ),
        grid_spec=pltpu.PrefetchScalarGridSpec(
            num_scalar_prefetch=0,
            grid=grid,
            in_specs=[
                # NOTE: sweep pipeline_mode=pl.Buffered(3) here if the profile
                # shows exposed DMA between the short per-step compute phases.
                pl.BlockSpec((bt, LD), lambda b: (b, 0)),
                pl.BlockSpec((LD, L), lambda b: (0, 0)),   # resident
                pl.BlockSpec((L, LD), lambda b: (0, 0)),   # resident
                pl.BlockSpec((LD, D), lambda b: (0, 0)),   # resident
            ],
            out_specs=[
                pl.BlockSpec((bt, D), lambda b: (b, 0)),
                pl.BlockSpec((bt, L), lambda b: (b, 0)),
            ],
        ),
        compiler_params=pltpu.CompilerParams(
            dimension_semantics=("parallel",),
            vmem_limit_bytes=vmem_limit),
        cost_estimate=cost,
    )(x_p, w_score, e_mat, s_mat)

    return repres2d.reshape(B, 1, D), alpha


def _rec_attention_3d(iput, context_vector, tile_target, vmem_limit, min_grid,
                      block_rows):
    B, L, D = iput.shape
    dtype = iput.dtype
    w_row = context_vector.reshape(1, D).astype(dtype)

    if block_rows is not None:
        bt = min(block_rows, B)
    else:
        bt = _choose_bt(B, L, D, tile_vmem=_3d_tile_vmem, resident=1 << 16,
                        tile_target=tile_target, vmem_limit=vmem_limit,
                        min_grid=min_grid)
    grid = (pl.cdiv(B, bt),)

    cost = pl.CostEstimate(
        flops=4 * B * L * D,
        transcendentals=B * L + B,
        bytes_accessed=(B * L * D + B * D + B * L + D) * _ITEM,
    )

    repres2d, alpha = pl.pallas_call(
        _rec_attention_3d_kernel,
        out_shape=(
            jax.ShapeDtypeStruct((B, D), dtype),
            jax.ShapeDtypeStruct((B, L), dtype),
        ),
        grid_spec=pltpu.PrefetchScalarGridSpec(
            num_scalar_prefetch=0,
            grid=grid,
            in_specs=[
                pl.BlockSpec((bt, L, D), lambda b: (b, 0, 0)),
                pl.BlockSpec((1, D), lambda b: (0, 0)),
            ],
            out_specs=[
                pl.BlockSpec((bt, D), lambda b: (b, 0)),
                pl.BlockSpec((bt, L), lambda b: (b, 0)),
            ],
        ),
        compiler_params=pltpu.CompilerParams(
            dimension_semantics=("parallel",),
            vmem_limit_bytes=vmem_limit),
        cost_estimate=cost,
    )(iput, w_row)

    return repres2d.reshape(B, 1, D), alpha


def rec_attention(iput, context_vector, block_rows=None):
    """Pallas implementation of rec_attention.forward.

    iput:            (B, L, D) float32
    context_vector:  (D, 1) float32
    returns (repres, alpha) with shapes (B, 1, D), (B, L)
    """
    B, L, D = iput.shape
    assert context_vector.shape == (D, 1)

    tile_target, vmem_limit, min_grid = _device_budgets()

    # Packed (lane-dense) path uses O(L^2*D)-sized constant helper matrices;
    # only use it while they stay small.
    if _packed_resident_vmem(L, D) <= (8 << 20):
        return _rec_attention_packed(iput, context_vector, tile_target,
                                     vmem_limit, min_grid, block_rows)
    # TODO(synk): for very long sequences, replace the kron helpers with an
    # in-kernel segmented lane reduce instead of falling back to the
    # lane-sparse 3-D layout.
    return _rec_attention_3d(iput, context_vector, tile_target, vmem_limit,
                             min_grid, block_rows)


def rec_attention_ref(iput, context_vector):
    # pure-JAX reference (mirrors the PyTorch forward exactly)
    scores = jnp.einsum("bld,do->bl", iput, context_vector)      # (B, L)
    alpha = jax.nn.softmax(scores, axis=1)                       # softmax over L
    repres = jnp.einsum("bl,bld->bd", alpha, iput)[:, None, :]   # (B, 1, D)
    return repres, alpha


if __name__ == "__main__":
    # args.bin_rnn_size = 32, bidirectional=False, hm=True -> bin_rep_size = 32
    B, L, D = 2, 8, 32

    key = jax.random.PRNGKey(0)
    k_x, k_w = jax.random.split(key)
    iput = jax.random.normal(k_x, (B, L, D), dtype=jnp.float32)
    # nn.Parameter init: uniform_(-0.1, 0.1), deterministic here
    context_vector = jax.random.uniform(
        k_w, (D, 1), dtype=jnp.float32, minval=-0.1, maxval=0.1)

    repres, alpha = rec_attention(iput, context_vector)
    repres = jax.block_until_ready(repres)
    alpha = jax.block_until_ready(alpha)

    repres_ref, alpha_ref = rec_attention_ref(iput, context_vector)
    assert repres.shape == (B, 1, D) and alpha.shape == (B, L)
    assert jnp.allclose(repres, repres_ref, atol=1e-4, rtol=1e-4)
    assert jnp.allclose(alpha, alpha_ref, atol=1e-4, rtol=1e-4)

    # second check: non-divisible batch exercises the padding-free cdiv grid
    # with a partial (masked) last block.
    B2 = 20
    iput2 = jax.random.normal(jax.random.PRNGKey(1), (B2, L, D), jnp.float32)
    repres2, alpha2 = rec_attention(iput2, context_vector, block_rows=16)
    repres2 = jax.block_until_ready(repres2)
    alpha2 = jax.block_until_ready(alpha2)
    repres2_ref, alpha2_ref = rec_attention_ref(iput2, context_vector)
    assert jnp.allclose(repres2, repres2_ref, atol=1e-4, rtol=1e-4)
    assert jnp.allclose(alpha2, alpha2_ref, atol=1e-4, rtol=1e-4)

    print("KERNEL_OK")
</pallas_src>

<mosaic_0001>
module attributes {stable_mosaic.version = 11 : i64} {
  func.func @_rec_attention_packed_kernel(%arg0: i32, %arg1: memref<2x256xf32, #tpu.memory_space<vmem>>, %arg2: memref<256x8xf32, #tpu.memory_space<vmem>>, %arg3: memref<8x256xf32, #tpu.memory_space<vmem>>, %arg4: memref<256x32xf32, #tpu.memory_space<vmem>>, %arg5: memref<2x32xf32, #tpu.memory_space<vmem>>, %arg6: memref<2x8xf32, #tpu.memory_space<vmem>>) attributes {dimension_semantics = [#tpu.dimension_semantics<parallel>], iteration_bounds = array<i64: 1>, scalar_prefetch = 0 : i64, scratch_operands = 0 : i64, tpu.core_type = #tpu.core_type<tc>, window_params = [{transform_indices = @transform_0, window_bounds = array<i64: 2, 256>}, {pipeline_mode = #tpu.pipeline_mode<synchronous>, transform_indices = @transform_1, window_bounds = array<i64: 256, 8>}, {pipeline_mode = #tpu.pipeline_mode<synchronous>, transform_indices = @transform_2, window_bounds = array<i64: 8, 256>}, {pipeline_mode = #tpu.pipeline_mode<synchronous>, transform_indices = @transform_3, window_bounds = array<i64: 256, 32>}, {transform_indices = @transform_4, window_bounds = array<i64: 2, 32>}, {transform_indices = @transform_5, window_bounds = array<i64: 2, 8>}]} {
    %c0 = arith.constant 0 : index
    %c0_0 = arith.constant 0 : index
    %0 = vector.load %arg1[%c0, %c0_0] : memref<2x256xf32, #tpu.memory_space<vmem>>, vector<2x256xf32>
    %c0_1 = arith.constant 0 : index
    %c0_2 = arith.constant 0 : index
    %1 = vector.load %arg2[%c0_1, %c0_2] : memref<256x8xf32, #tpu.memory_space<vmem>>, vector<256x8xf32>
    %cst = arith.constant dense<0.000000e+00> : vector<2x8xf32>
    %2 = tpu.matmul %0, %1, %cst {dimension_numbers = #tpu.dot_dimension_numbers<[1], [0], [0], [1], [0, 0, 1, 1], [], []>} : vector<2x256xf32>, vector<256x8xf32>, vector<2x8xf32> -> vector<2x8xf32>
    %cst_3 = arith.constant dense<0xFF800000> : vector<2xf32>
    %3 = vector.multi_reduction <maximumf>, %2, %cst_3 [1] : vector<2x8xf32> to vector<2xf32>
    %4 = vector.shape_cast %3 : vector<2xf32> to vector<2x1xf32>
    %5 = vector.broadcast %4 : vector<2x1xf32> to vector<2x8xf32>
    %6 = arith.subf %2, %5 : vector<2x8xf32>
    %7 = math.exp %6 : vector<2x8xf32>
    %cst_4 = arith.constant dense<0.000000e+00> : vector<2xf32>
    %8 = vector.multi_reduction <add>, %7, %cst_4 [1] : vector<2x8xf32> to vector<2xf32>
    %9 = vector.shape_cast %8 : vector<2xf32> to vector<2x1xf32>
    %10 = tpu.reciprocal %9 {approx = true} : vector<2x1xf32> -> vector<2x1xf32>
    %11 = arith.mulf %9, %10 : vector<2x1xf32>
    %cst_5 = arith.constant 2.000000e+00 : f32
    %12 = vector.broadcast %cst_5 : f32 to vector<2x1xf32>
    %13 = arith.subf %12, %11 : vector<2x1xf32>
    %14 = arith.mulf %10, %13 : vector<2x1xf32>
    %15 = vector.broadcast %14 : vector<2x1xf32> to vector<2x8xf32>
    %16 = arith.mulf %7, %15 : vector<2x8xf32>
    %c0_6 = arith.constant 0 : index
    %c0_7 = arith.constant 0 : index
    %17 = vector.load %arg3[%c0_6, %c0_7] : memref<8x256xf32, #tpu.memory_space<vmem>>, vector<8x256xf32>
    %cst_8 = arith.constant dense<0.000000e+00> : vector<2x256xf32>
    %18 = tpu.matmul %16, %17, %cst_8 {dimension_numbers = #tpu.dot_dimension_numbers<[1], [0], [0], [1], [0, 0, 1, 1], [], []>} : vector<2x8xf32>, vector<8x256xf32>, vector<2x256xf32> -> vector<2x256xf32>
    %19 = arith.mulf %18, %0 : vector<2x256xf32>
    %c0_9 = arith.constant 0 : index
    %c0_10 = arith.constant 0 : index
    %20 = vector.load %arg4[%c0_9, %c0_10] : memref<256x32xf32, #tpu.memory_space<vmem>>, vector<256x32xf32>
    %cst_11 = arith.constant dense<0.000000e+00> : vector<2x32xf32>
    %21 = tpu.matmul %19, %20, %cst_11 {dimension_numbers = #tpu.dot_dimension_numbers<[1], [0], [0], [1], [0, 0, 1, 1], [], []>} : vector<2x256xf32>, vector<256x32xf32>, vector<2x32xf32> -> vector<2x32xf32>
    %c0_12 = arith.constant 0 : index
    %c0_13 = arith.constant 0 : index
    %22 = vector.load %arg5[%c0_12, %c0_13] : memref<2x32xf32, #tpu.memory_space<vmem>>, vector<2x32xf32>
    tpu.vector_store %arg5[%c0_12, %c0_13], %21 {strides = array<i32>} : memref<2x32xf32, #tpu.memory_space<vmem>>, vector<2x32xf32>,
    %c0_14 = arith.constant 0 : index
    %c0_15 = arith.constant 0 : index
    %23 = vector.load %arg6[%c0_14, %c0_15] : memref<2x8xf32, #tpu.memory_space<vmem>>, vector<2x8xf32>
    tpu.vector_store %arg6[%c0_14, %c0_15], %16 {strides = array<i32>} : memref<2x8xf32, #tpu.memory_space<vmem>>, vector<2x8xf32>,
    return
  }
  func.func @transform_0(%arg0: i32) -> (i32, i32) {
    %c0_i32 = arith.constant 0 : i32
    %c0_i32_0 = arith.constant 0 : i32
    return %arg0, %c0_i32 : i32, i32
  }
  func.func @transform_1(%arg0: i32) -> (i32, i32) {
    %c0_i32 = arith.constant 0 : i32
    %c0_i32_0 = arith.constant 0 : i32
    %c0_i32_1 = arith.constant 0 : i32
    return %c0_i32, %c0_i32_0 : i32, i32
  }
  func.func @transform_2(%arg0: i32) -> (i32, i32) {
    %c0_i32 = arith.constant 0 : i32
    %c0_i32_0 = arith.constant 0 : i32
    %c0_i32_1 = arith.constant 0 : i32
    return %c0_i32, %c0_i32_0 : i32, i32
  }
  func.func @transform_3(%arg0: i32) -> (i32, i32) {
    %c0_i32 = arith.constant 0 : i32
    %c0_i32_0 = arith.constant 0 : i32
    %c0_i32_1 = arith.constant 0 : i32
    return %c0_i32, %c0_i32_0 : i32, i32
  }
  func.func @transform_4(%arg0: i32) -> (i32, i32) {
    %c0_i32 = arith.constant 0 : i32
    %c0_i32_0 = arith.constant 0 : i32
    return %arg0, %c0_i32 : i32, i32
  }
  func.func @transform_5(%arg0: i32) -> (i32, i32) {
    %c0_i32 = arith.constant 0 : i32
    %c0_i32_0 = arith.constant 0 : i32
    return %arg0, %c0_i32 : i32, i32
  }
}

</mosaic_0001>

<bundles_post_ra>
// kernel: tpu_custom_call.1
= control target key start
LH: loop header
LB: loop body
LE: loop exit
PB: predicated region body
PF: predicated region fallthrough
CT: control target
= control target key end

     0   :  { %11 = vsyncpa [#allocation3], 0  ;;  %s824_s0 = inlined_call_operand.vmem [shape: f32[2,256], index: 0, kind: input, shape index: {}]   ;;  %s825_s1 = inlined_call_operand.vmem [shape: f32[256,8], index: 1, kind: input, shape index: {}]   ;;  %s826_s2 = inlined_call_operand.vmem [shape: f32[8,256], index: 2, kind: input, shape index: {}]   ;;  %s827_s3 = inlined_call_operand.vmem [shape: f32[256,32], index: 3, kind: input, shape index: {}]   ;;  %s828_s4 = inlined_call_operand.hbm [shape: f32[2,32], index: 4, kind: output, shape index: {0}]   ;;  %s829_s5 = inlined_call_operand.hbm [shape: f32[2,8], index: 5, kind: output, shape index: {1}]  }
   0x1   :  { %v38_v0 = vld [vmem:[%s825_s1 + $0x80] sm:$0xff]  ;;  %v39_v1 = vld [vmem:[%s825_s1 + $0x88] sm:$0xff]  ;;  %v40_v5 = vld [vmem:[%s825_s1 + $0x90] sm:$0xff] }
   0x2   :  { %v22_v2 = vld [vmem:[%s825_s1] sm:$0xff]  ;;  %v434_v3 = vpack.c.bf16 %v39_v1, %v38_v0  ;;  %v23_v4 = vld [vmem:[%s825_s1 + $0x8] sm:$0xff]  ;;  %v41_v6 = vld [vmem:[%s825_s1 + $0x98] sm:$0xff] }
   0x3   :  { %v436_v7 = vpack.c.bf16 %v23_v4, %v22_v2  ;;  %v438_v8 = vpack.c.bf16 %v41_v6, %v40_v5  ;;  %v24_v9 = vld [vmem:[%s825_s1 + $0x10] sm:$0xff]  ;;  %v25_v10 = vld [vmem:[%s825_s1 + $0x18] sm:$0xff]  ;;  %v42_v11 = vld [vmem:[%s825_s1 + $0xa0] sm:$0xff] }
   0x4   :  { %435 = vmatprep.subr.bf16.mxu0 %v434_v3  ;;  %v43_v12 = vld [vmem:[%s825_s1 + $0xa8] sm:$0xff]  ;;  %v440_v13 = vpack.c.bf16 %v25_v10, %v24_v9  ;;  %v26_v15 = vld [vmem:[%s825_s1 + $0x20] sm:$0xff]  ;;  %v44_v17 = vld [vmem:[%s825_s1 + $0xb0] sm:$0xff] }
   0x5   :  { %437 = vmatpush3.bf16.msra.mxu0 %v436_v7  ;;  %v442_v14 = vpack.c.bf16 %v43_v12, %v42_v11  ;;  %v27_v16 = vld [vmem:[%s825_s1 + $0x28] sm:$0xff]  ;;  %v45_v18 = vld [vmem:[%s825_s1 + $0xb8] sm:$0xff]  ;;  %v28_v21 = vld [vmem:[%s825_s1 + $0x30] sm:$0xff] }
   0x6   :  { %439 = vmatprep.subr.bf16.mxu0 %v438_v8  ;;  %v444_v19 = vpack.c.bf16 %v27_v16, %v26_v15  ;;  %v446_v20 = vpack.c.bf16 %v45_v18, %v44_v17  ;;  %v29_v22 = vld [vmem:[%s825_s1 + $0x38] sm:$0xff]  ;;  %v46_v23 = vld [vmem:[%s825_s1 + $0xc0] sm:$0xff]  ;;  %v47_v24 = vld [vmem:[%s825_s1 + $0xc8] sm:$0xff] }
   0x7   :  { %v643_v25 = vld.sshfl [vmem:[%s824_s0] sm:$0x33 pattern:$0x76325410] }
   0x8   :  { %v647_v26 = vcombine.high %v643_v25, %v643_v25 }
   0x9   :  { %441 = vmatpush3.bf16.msra.mxu0 %v440_v13 }
   0xa   :  { %443 = vmatprep.subr.bf16.mxu0 %v442_v14 }
   0xb   :  { %12 = vsyncpa [#allocation5], 0  ;;  %v448_v27 = vpack.c.bf16 %v29_v22, %v28_v21  ;;  %v450_v28 = vpack.c.bf16 %v47_v24, %v46_v23  ;;  %v30_v29 = vld [vmem:[%s825_s1 + $0x40] sm:$0xff]  ;;  %v31_v30 = vld [vmem:[%s825_s1 + $0x48] sm:$0xff]  ;;  %129 = vmatprep.mubr.f32.mxu0 %v647_v26  ;;  %vm135_vm0 = vcmask 58368   ;;  %v553_v61 = vmov 0.0  }
   0xc   :  { %v48_v31 = vld [vmem:[%s825_s1 + $0xd0] sm:$0xff]  ;;  %v49_v32 = vld [vmem:[%s825_s1 + $0xd8] sm:$0xff]  ;;  %v452_v33 = vpack.c.bf16 %v31_v30, %v30_v29  ;;  %v50_v37 = vld [vmem:[%s825_s1 + $0xe0] sm:$0xff]  ;;  %220 = vmatprep.mubr.f32.mxu1 %v553_v61  ;;  %vm152_vm1 = vcmask 64512   ;;  %s554_s17 = smov [#allocation4]  }
   0xd   :  { %445 = vmatpush3.bf16.msra.mxu0 %v444_v19  ;;  %v454_v34 = vpack.c.bf16 %v49_v32, %v48_v31  ;;  %v32_v35 = vld [vmem:[%s825_s1 + $0x50] sm:$0xff]  ;;  %v33_v36 = vld [vmem:[%s825_s1 + $0x58] sm:$0xff]  ;;  %v51_v38 = vld [vmem:[%s825_s1 + $0xe8] sm:$0xff]  ;;  %s350_s18 = sshll.u32 %s554_s17, 4  ;;  %s351_s18 = int_to_ptr.vmem [resolvable:$true] %s350_s18 }
   0xe   :  { %447 = vmatprep.subr.bf16.mxu0 %v446_v20  ;;  %v456_v39 = vpack.c.bf16 %v33_v36, %v32_v35  ;;  %v458_v40 = vpack.c.bf16 %v51_v38, %v50_v37  ;;  %v34_v41 = vld [vmem:[%s825_s1 + $0x60] sm:$0xff]  ;;  %v35_v42 = vld [vmem:[%s825_s1 + $0x68] sm:$0xff]  ;;  %v52_v43 = vld [vmem:[%s825_s1 + $0xf0] sm:$0xff]  ;;  %s505_s19 = scalar_lea.vmem %s351_s18, 32  ;;  %p510_p1 = scmp.lt.s32.totalorder %s351_s18, %s351_s18 }
   0xf   :  { %v53_v44 = vld [vmem:[%s825_s1 + $0xf8] sm:$0xff]  ;;  %v460_v45 = vpack.c.bf16 %v35_v42, %v34_v41  ;;  %v36_v47 = vld [vmem:[%s825_s1 + $0x70] sm:$0xff]  ;;  %v151_v59 = vld [vmem:[%s826_s2 + $0x8] sm:$0xff]  ;;  %p506_p0 = scmp.ne.s32.totalorder %s351_s18, %s505_s19  ;;  %p511_p2 = scmp.lt.s32.totalorder %s505_s19, %s505_s19 }
  0x10   :  { %v462_v46 = vpack.c.bf16 %v53_v44, %v52_v43  ;;  %v37_v48 = vld [vmem:[%s825_s1 + $0x78] sm:$0xff]  ;;  %156 = vmatprep.subr.mxu1 %v151_v59  ;;  %v150_v60 = vld [vmem:[%s826_s2] sm:$0xff]  ;;  %v246_v63 = vld [vmem:[%s827_s3 + $0x88] sm:$0xff] }
  0x11   :  { %449 = vmatpush3.bf16.msra.mxu0 %v448_v27  ;;  %v464_v49 = vpack.c.bf16 %v37_v48, %v36_v47  ;;  %157 = vmatpush1.msra.mxu1 %v150_v60  ;;  %v245_v62 = vld [vmem:[%s827_s3 + $0x80] sm:$0xff]  ;;  %v230_v6 = vld [vmem:[%s827_s3 + $0x8] sm:$0xff]  ;;  %v247_v7 = vld [vmem:[%s827_s3 + $0x90] sm:$0xff]  ;;  %p512_p3 = por %p511_p2, %p510_p1 }
  0x12   :  { %451 = vmatprep.subr.bf16.mxu0 %v450_v28  ;;  %v466_v0 = vpack.c.bf16 %v246_v63, %v245_v62  ;;  %v229_v5 = vld [vmem:[%s827_s3] sm:$0xff]  ;;  %v248_v8 = vld [vmem:[%s827_s3 + $0x98] sm:$0xff]  ;;  %v231_v13 = vld [vmem:[%s827_s3 + $0x10] sm:$0xff] }
  0x13   :  { %v468_v10 = vpack.c.bf16 %v230_v6, %v229_v5  ;;  %v470_v12 = vpack.c.bf16 %v248_v8, %v247_v7  ;;  %v232_v14 = vld [vmem:[%s827_s3 + $0x18] sm:$0xff]  ;;  %v249_v15 = vld [vmem:[%s827_s3 + $0xa0] sm:$0xff]  ;;  %v250_v16 = vld [vmem:[%s827_s3 + $0xa8] sm:$0xff]  ;;  %p513_p4 = pnand %p512_p3, %p506_p0 }
  0x14   :  { %467 = vmatprep.subr.bf16.mxu1 %v466_v0  ;;  %v472_v17 = vpack.c.bf16 %v232_v14, %v231_v13  ;;  %v474_v18 = vpack.c.bf16 %v250_v16, %v249_v15  ;;  %v233_v19 = vld [vmem:[%s827_s3 + $0x20] sm:$0xff]  ;;  %v234_v20 = vld [vmem:[%s827_s3 + $0x28] sm:$0xff]  ;;  %v251_v21 = vld [vmem:[%s827_s3 + $0xb0] sm:$0xff] }
  0x15   :  { %453 = vmatpush3.bf16.msra.mxu0 %v452_v33  ;;  %v252_v22 = vld [vmem:[%s827_s3 + $0xb8] sm:$0xff]  ;;  %v476_v23 = vpack.c.bf16 %v234_v20, %v233_v19  ;;  %v235_v27 = vld [vmem:[%s827_s3 + $0x30] sm:$0xff]  ;;  %v253_v29 = vld [vmem:[%s827_s3 + $0xc0] sm:$0xff] }
  0x16   :  { %455 = vmatprep.subr.bf16.mxu0 %v454_v34  ;;  %v478_v24 = vpack.c.bf16 %v252_v22, %v251_v21  ;;  %v236_v28 = vld [vmem:[%s827_s3 + $0x38] sm:$0xff]  ;;  %v254_v30 = vld [vmem:[%s827_s3 + $0xc8] sm:$0xff]  ;;  %v237_v33 = vld [vmem:[%s827_s3 + $0x40] sm:$0xff] }
  0x17   :  { %v480_v31 = vpack.c.bf16 %v236_v28, %v235_v27  ;;  %v482_v32 = vpack.c.bf16 %v254_v30, %v253_v29  ;;  %v238_v34 = vld [vmem:[%s827_s3 + $0x48] sm:$0xff]  ;;  %v255_v35 = vld [vmem:[%s827_s3 + $0xd0] sm:$0xff]  ;;  %v256_v36 = vld [vmem:[%s827_s3 + $0xd8] sm:$0xff] }
  0x18   :  { %v484_v37 = vpack.c.bf16 %v238_v34, %v237_v33  ;;  %v486_v38 = vpack.c.bf16 %v256_v36, %v255_v35  ;;  %v257_v41 = vld [vmem:[%s827_s3 + $0xe0] sm:$0xff]  ;;  %v258_v42 = vld [vmem:[%s827_s3 + $0xe8] sm:$0xff]  ;;  %v259_v48 = vld [vmem:[%s827_s3 + $0xf0] sm:$0xff] }
  0x19   :  { %457 = vmatpush3.bf16.msra.mxu0 %v456_v39  ;;  %v239_v39 = vld [vmem:[%s827_s3 + $0x50] sm:$0xff]  ;;  %v490_v44 = vpack.c.bf16 %v258_v42, %v257_v41 }
  0x1a   :  { %459 = vmatprep.subr.bf16.mxu0 %v458_v40  ;;  %v240_v40 = vld [vmem:[%s827_s3 + $0x58] sm:$0xff] }
  0x1b   :  { %v488_v43 = vpack.c.bf16 %v240_v40, %v239_v39 }
  0x1d   :  { %461 = vmatpush3.bf16.msra.mxu0 %v460_v45  ;;  %v241_v45 = vld [vmem:[%s827_s3 + $0x60] sm:$0xff] }
  0x1e   :  { %463 = vmatprep.subr.bf16.mxu0 %v462_v46  ;;  %v242_v46 = vld [vmem:[%s827_s3 + $0x68] sm:$0xff] }
  0x1f   :  { %v492_v47 = vpack.c.bf16 %v242_v46, %v241_v45 }
  0x21   :  { %465 = vmatpush3.bf16.msra.mxu0 %v464_v49  ;;  %v260_v49 = vld [vmem:[%s827_s3 + $0xf8] sm:$0xff] }
  0x24   :  { %130 = vmatmul.mubr.f32.vlgmr.msra.gmra.mrb[0].mxu0 %v643_v25 }
  0xf7   :  { %v396_v50 = vpop.f32.mrb[0].mxu0 }
  0xf8   :  { %v397_v51 = vpop.f32.mrb[1].mxu0 }
  0xf9   :  { %v398_v52 = vadd.f32 %v397_v51, %v396_v50  ;;  %v494_v50 = vpack.c.bf16 %v260_v49, %v259_v48  ;;  %v243_v51 = vld [vmem:[%s827_s3 + $0x70] sm:$0xff] }
  0xfb   :  { %v136_v53 = vsel %vm135_vm0, %v398_v52, -inf }
  0xfc   :  { %137 = vmax.xlane.f32.xlu0 %v136_v53 }
 0x189   :  { %v138_v54 = vpop.xlane.xlu0 %137 }
 0x18a   :  { %v139_v55 = vsub.f32 %v398_v52, %v138_v54  ;;  %v244_v52 = vld [vmem:[%s827_s3 + $0x78] sm:$0xff] }
 0x18b   :  { %v496_v53 = vpack.c.bf16 %v244_v52, %v243_v51 }
 0x18c   :  { %v140_v56 = vmul.f32 1.442695, %v139_v55 }
 0x18e   :  { %501 = vpow2.f32 %v140_v56 }
 0x198   :  { %v502_v57 = vpop.eup %501 }
 0x199   :  { %v142_v58 = vsel %vm135_vm0, %v502_v57, 0.0 }
 0x19a   :  { %143 = vadd.xlane.f32.xlu0 %v142_v58 }
 0x227   :  { %v144_v1 = vpop.xlane.xlu0 %143 }
 0x228   :  { %503 = vrcp.f32 %v144_v1 }
 0x232   :  { %v504_v2 = vpop.eup %503 }
 0x233   :  { %v146_v3 = vmul.f32 %v504_v2, %v144_v1 }
 0x235   :  { %v147_v4 = vsub.f32 2.0, %v146_v3 }
 0x237   :  { %v148_v9 = vmul.f32 %v504_v2, %v147_v4 }
 0x239   :  { %v149_v11 = vmul.f32 %v502_v57, %v148_v9 }
 0x23b   :  { %333 = vst.msk [vmem:[#allocation4] sm:$0x3] %vm135_vm0, %v149_v11  ;;  %363 = vmatmul.mubr.msk.f32.vlgmr.msra.gmra.mrb[0].mxu1 %vm152_vm1, %v149_v11 }
 0x23c   :  { %469 = vmatpush3.bf16.msra.mxu1 %v468_v10 }
 0x23d   :  { %471 = vmatprep.subr.bf16.mxu1 %v470_v12 }
 0x240   :  { %473 = vmatpush3.bf16.msra.mxu1 %v472_v17 }
 0x241   :  { %475 = vmatprep.subr.bf16.mxu1 %v474_v18 }
 0x244   :  { %477 = vmatpush3.bf16.msra.mxu1 %v476_v23 }
 0x245   :  { %479 = vmatprep.subr.bf16.mxu1 %v478_v24 }
 0x248   :  { %481 = vmatpush3.bf16.msra.mxu1 %v480_v31 }
 0x249   :  { %483 = vmatprep.subr.bf16.mxu1 %v482_v32 }
 0x24c   :  { %485 = vmatpush3.bf16.msra.mxu1 %v484_v37 }
 0x24d   :  { %487 = vmatprep.subr.bf16.mxu1 %v486_v38 }
 0x250   :  { %489 = vmatpush3.bf16.msra.mxu1 %v488_v43 }
 0x251   :  { %491 = vmatprep.subr.bf16.mxu1 %v490_v44 }
 0x254   :  { %493 = vmatpush3.bf16.msra.mxu1 %v492_v47 }
 0x255   :  { %495 = vmatprep.subr.bf16.mxu1 %v494_v50 }
 0x258   :  { %497 = vmatpush3.bf16.msra.mxu1 %v496_v53 }
 0x30e   :  { %v222_v54 = vpop.f32.mrb[0].mxu1 }
 0x30f   :  { %v224_v55 = vpop.f32.mrb[1].mxu1  ;;  %v227_v57 = vmul.f32 %v643_v25, %v222_v54 }
 0x310   :  { %v228_v56 = vmul.f32 %v224_v55, %v647_v26 }
 0x312   :  { %325 = vmatprep.mubr.f32.mxu1 %v228_v56 }
 0x313   :  { %326 = vmatmul.mubr.f32.vlgmr.msra.gmra.mrb[2].mxu1 %v227_v57 }
 0x314   :  { %516 = shalt.err (!%p513_p4)
}
 0x315   :  { %s517_s21 = scalar_lea.hbm %s829_s5, 32 }
 0x316   :  { %p518_p5 = scmp.ne.s32.totalorder %s829_s5, %s517_s21  ;;  %p521_p6 = scmp.lt.u32.totalorder %s517_s21, %s829_s5 }
 0x318   :  { %p523_p7 = pnand %p521_p6, %p518_p5 }
 0x31a   :  { %526 = shalt.err (!%p523_p7)
}
 0x31b   :  { %353 = dma.vmem_to_hbm [thread:$0]  %s351_s18, 32, %s829_s5, [#allocation5]   ;;  %vm331_vm2 = vcmask 254976  }
 0x31c   :  { %s555_s28 = smov [#allocation2]  }
 0x31d   :  { %s340_s29 = sshll.u32 %s555_s28, 4  ;;  %s341_s29 = int_to_ptr.vmem [resolvable:$true] %s340_s29 }
 0x31e   :  { %s527_s30 = scalar_lea.vmem %s341_s29, 32  ;;  %p532_p9 = scmp.lt.s32.totalorder %s341_s29, %s341_s29 }
 0x31f   :  { %p528_p8 = scmp.ne.s32.totalorder %s341_s29, %s527_s30  ;;  %p533_p10 = scmp.lt.s32.totalorder %s527_s30, %s527_s30 }
 0x321   :  { %p534_p11 = por %p533_p10, %p532_p9 }
 0x323   :  { %p535_p12 = pnand %p534_p11, %p528_p8 }
 0x3e6   :  { %v431_v25 = vpop.f32.mrb[2].mxu1 }
 0x3e7   :  { %v432_v26 = vpop.f32.mrb[3].mxu1 }
 0x3e8   :  { %v433_v58 = vadd.f32 %v432_v26, %v431_v25 }
 0x3ea   :  { %332 = vst.msk [vmem:[#allocation2] sm:$0x3] %vm331_vm2, %v433_v58 }
 0x3eb   :  { %538 = shalt.err (!%p535_p12)
}
 0x3ec   :  { %s539_s1 = scalar_lea.hbm %s828_s4, 32 }
 0x3ed   :  { %p540_p13 = scmp.ne.s32.totalorder %s828_s4, %s539_s1  ;;  %p543_p0 = scmp.lt.u32.totalorder %s539_s1, %s828_s4 }
 0x3ef   :  { %p545_p1 = pnand %p543_p0, %p540_p13 }
 0x3f1   :  { %548 = shalt.err (!%p545_p1)
}
 0x3f2   :  { %343 = dma.vmem_to_hbm [thread:$0]  %s341_s29, 32, %s828_s4, [#allocation3]  }
 0x3f3   :  { %549 = dma.done.wait [#allocation3], 32  }
 0x3f4   :  { %550 = vsyncadd [#allocation3], 4294967264 }
 0x3f5   :  { %551 = dma.done.wait [#allocation5], 32  }
 0x3f6   :  { %552 = vsyncadd [#allocation5], 4294967264 }
 0x3f7   :  { %360 = vsyncpa [#allocation3], 1 }
 0x3f8   :  { %361 = vsyncpa [#allocation5], 1 }

</bundles_post_ra>
